<compile_context>
chip_gen: v6e
topology: v6e:2x2x1
jax: 0.10.0
libtpu: 0.0.40
codegen_flags: <defaults>
</compile_context>

<pallas_src>
import math
from typing import NamedTuple

import jax
import jax.numpy as jnp
from jax.experimental import pallas as pl
from jax.experimental.pallas import tpu as pltpu


def _gelu_tanh(g):
    c = math.sqrt(2.0 / math.pi)
    return 0.5 * g * (1.0 + jnp.tanh(c * (g + 0.044715 * g * g * g)))


def _round_up(a, b):
    return (a + b - 1) // b * b


class PackedGEGLU(NamedTuple):
    w: jax.Array   # (Kp, 2*Np) compute dtype; per tn-tile interleave [Wv_j | Wg_j]
    b: jax.Array   # (1, 2*Np) f32; same interleave
    dim_in: int
    dim_out: int
    tn: int
    tk: int


def pack_geglu_params(weight, bias, *, tn=512, tk=1024,
                      compute_dtype=jnp.bfloat16):
    """One-time packing of nn.Linear(dim_in, 2*dim_out) parameters.

    weight : (2*dim_out, dim_in)  -- PyTorch nn.Linear layout
    bias   : (2*dim_out,)
    Call this once and reuse the result; it is the only place the weight is
    transposed / padded / cast, so the per-call hot path pays no weight traffic
    beyond the kernel's own streaming.
    """
    two_n, dim_in = weight.shape
    assert two_n % 2 == 0
    dim_out = two_n // 2

    tn = min(tn, _round_up(dim_out, 128))
    tk = min(tk, _round_up(dim_in, 128))
    Np = _round_up(dim_out, tn)
    Kp = _round_up(dim_in, tk)

    wv = weight[:dim_out, :].T            # (K, N)
    wg = weight[dim_out:, :].T            # (K, N)
    bv = bias[:dim_out].reshape(1, dim_out)
    bg = bias[dim_out:].reshape(1, dim_out)
    if (Kp, Np) != (dim_in, dim_out):
        wv = jnp.pad(wv, ((0, Kp - dim_in), (0, Np - dim_out)))
        wg = jnp.pad(wg, ((0, Kp - dim_in), (0, Np - dim_out)))
        bv = jnp.pad(bv, ((0, 0), (0, Np - dim_out)))
        bg = jnp.pad(bg, ((0, 0), (0, Np - dim_out)))

    nblk = Np // tn
    # Interleave so that output-tile j's weight block is the contiguous
    # column range [j*2*tn, (j+1)*2*tn) = [Wv_j | Wg_j].
    w_packed = jnp.concatenate(
        [wv.reshape(Kp, nblk, tn), wg.reshape(Kp, nblk, tn)], axis=-1
    ).reshape(Kp, 2 * Np).astype(compute_dtype)
    b_packed = jnp.concatenate(
        [bv.reshape(1, nblk, tn), bg.reshape(1, nblk, tn)], axis=-1
    ).reshape(1, 2 * Np).astype(jnp.float32)

    return PackedGEGLU(w_packed, b_packed, dim_in, dim_out, tn, tk)


def _geglu_kernel(x_ref, w_ref, b_ref, o_ref, acc_ref):
    # x_ref : (tm, tk)        w_ref : (tk, 2*tn)   b_ref : (1, 2*tn) f32
    # o_ref : (tm, tn)        acc_ref : (tm, 2*tn) f32 VMEM scratch
    k = pl.program_id(2)

    @pl.when(k == 0)
    def _():
        acc_ref[...] = jnp.zeros_like(acc_ref)

    acc_ref[...] += jnp.dot(x_ref[...], w_ref[...],
                            preferred_element_type=jnp.float32)

    @pl.when(k == pl.num_programs(2) - 1)
    def _():
        tn = o_ref.shape[1]
        y = acc_ref[...] + b_ref[...]
        val = y[:, :tn]
        gate = y[:, tn:]
        o_ref[...] = (val * _gelu_tanh(gate)).astype(o_ref.dtype)


def geglu(x, params: PackedGEGLU, *, tm=512):
    """GEGLU forward. x: (..., dim_in) -> (..., dim_out)."""
    dim_in, dim_out = params.dim_in, params.dim_out
    tn, tk = params.tn, params.tk
    Kp = params.w.shape[0]
    Np = params.w.shape[1] // 2
    out_dtype = x.dtype

    *lead, k_dim = x.shape
    assert k_dim == dim_in

    xm = x.reshape(-1, dim_in)
    M = xm.shape[0]

    # bf16 packs 16 rows per sublane group -> keep tm a multiple of 16.
    tm = min(tm, _round_up(M, 16))
    Mp = _round_up(M, tm)

    if (Mp, Kp) != (M, dim_in):          # pad only when actually needed
        xm = jnp.pad(xm, ((0, Mp - M), (0, Kp - dim_in)))
    if xm.dtype != params.w.dtype:       # bf16 MXU inputs, f32 accumulation
        xm = xm.astype(params.w.dtype)

    grid = (Mp // tm, Np // tn, Kp // tk)

    out = pl.pallas_call(
        _geglu_kernel,
        out_shape=jax.ShapeDtypeStruct((Mp, Np), out_dtype),
        grid_spec=pltpu.PrefetchScalarGridSpec(
            num_scalar_prefetch=0,
            grid=grid,
            in_specs=[
                pl.BlockSpec((tm, tk), lambda i, j, k: (i, k)),      # x
                pl.BlockSpec((tk, 2 * tn), lambda i, j, k: (k, j)),  # [Wv|Wg]
                pl.BlockSpec((1, 2 * tn), lambda i, j, k: (0, j)),   # [bv|bg]
            ],
            out_specs=pl.BlockSpec((tm, tn), lambda i, j, k: (i, j)),
            scratch_shapes=[pltpu.VMEM((tm, 2 * tn), jnp.float32)],
        ),
        compiler_params=pltpu.CompilerParams(
            dimension_semantics=("parallel", "parallel", "arbitrary"),
            vmem_limit_bytes=32 * 1024 * 1024,
        ),
        cost_estimate=pl.CostEstimate(
            flops=4 * Mp * Np * Kp,                 # two fused matmuls
            transcendentals=Mp * Np,                # tanh in GELU
            bytes_accessed=(xm.size * xm.dtype.itemsize * (Np // tn)
                            + params.w.size * params.w.dtype.itemsize * (Mp // tm)
                            + params.b.size * 4
                            + Mp * Np * jnp.dtype(out_dtype).itemsize),
        ),
    )(xm, params.w, params.b)

    if (Mp, Np) != (M, dim_out):
        out = out[:M, :dim_out]
    return out.reshape(*lead, dim_out)


if __name__ == "__main__":
    key = jax.random.PRNGKey(0)
    k_x, k_w, k_b = jax.random.split(key, 3)

    # Small shapes consistent with the module: batch=2, seq=8, dim_in=32, dim_out=64.
    batch, seq, dim_in, dim_out = 2, 8, 32, 64

    # nn.Linear default init: U(-1/sqrt(dim_in), 1/sqrt(dim_in)).
    bound = 1.0 / math.sqrt(dim_in)
    weight = jax.random.uniform(
        k_w, (2 * dim_out, dim_in), jnp.float32, -bound, bound)
    bias = jax.random.uniform(
        k_b, (2 * dim_out,), jnp.float32, -bound, bound)
    x = jax.random.normal(k_x, (batch, seq, dim_in), dtype=jnp.float32)

    # One-time parameter packing (hoisted out of the hot path).
    params = pack_geglu_params(weight, bias)

    out = jax.block_until_ready(geglu(x, params))

    # Pure-JAX f32 reference (same tanh-GELU formula as the kernel).
    y = x @ weight.T + bias
    val, gate = jnp.split(y, 2, axis=-1)
    ref = val * _gelu_tanh(gate)

    assert out.shape == (batch, seq, dim_out), out.shape
    assert out.dtype == jnp.float32, out.dtype
    max_err = float(jnp.max(jnp.abs(out - ref)))
    # bf16 MXU inputs with f32 accumulation vs f32 reference -> loose tolerance.
    assert max_err < 5e-2, f"max err {max_err}"

    print("KERNEL_OK")
</pallas_src>

<mosaic_0001>
module attributes {stable_mosaic.version = 11 : i64} {
  func.func @_geglu_kernel(%arg0: i32, %arg1: i32, %arg2: i32, %arg3: memref<16x128xbf16, #tpu.memory_space<vmem>>, %arg4: memref<128x256xbf16, #tpu.memory_space<vmem>>, %arg5: memref<1x256xf32, #tpu.memory_space<vmem>>, %arg6: memref<16x128xf32, #tpu.memory_space<vmem>>, %arg7: memref<16x256xf32, #tpu.memory_space<vmem>>) attributes {dimension_semantics = [#tpu.dimension_semantics<parallel>, #tpu.dimension_semantics<parallel>, #tpu.dimension_semantics<arbitrary>], iteration_bounds = array<i64: 1, 1, 1>, scalar_prefetch = 0 : i64, scratch_operands = 1 : i64, tpu.core_type = #tpu.core_type<tc>, window_params = [{transform_indices = @transform_0, window_bounds = array<i64: 16, 128>}, {transform_indices = @transform_1, window_bounds = array<i64: 128, 256>}, {transform_indices = @transform_2, window_bounds = array<i64: 1, 256>}, {transform_indices = @transform_3, window_bounds = array<i64: 16, 128>}]} {
    %c0_i32 = arith.constant 0 : i32
    %0 = arith.cmpi eq, %arg2, %c0_i32 : i32
    %1 = arith.extui %0 : i1 to i32
    %c0_i32_0 = arith.constant 0 : i32
    %2 = arith.cmpi ne, %1, %c0_i32_0 : i32
    scf.if %2 {
      %cst_10 = arith.constant 0.000000e+00 : f32
      %12 = vector.broadcast %cst_10 : f32 to vector<16x256xf32>
      %c0_11 = arith.constant 0 : index
      %c0_12 = arith.constant 0 : index
      %13 = vector.load %arg7[%c0_11, %c0_12] : memref<16x256xf32, #tpu.memory_space<vmem>>, vector<16x256xf32>
      tpu.vector_store %arg7[%c0_11, %c0_12], %12 {strides = array<i32>} : memref<16x256xf32, #tpu.memory_space<vmem>>, vector<16x256xf32>,
    } else {
    }
    %c0 = arith.constant 0 : index
    %c0_1 = arith.constant 0 : index
    %3 = vector.load %arg7[%c0, %c0_1] : memref<16x256xf32, #tpu.memory_space<vmem>>, vector<16x256xf32>
    %c0_2 = arith.constant 0 : index
    %c0_3 = arith.constant 0 : index
    %4 = vector.load %arg3[%c0_2, %c0_3] : memref<16x128xbf16, #tpu.memory_space<vmem>>, vector<16x128xbf16>
    %c0_4 = arith.constant 0 : index
    %c0_5 = arith.constant 0 : index
    %5 = vector.load %arg4[%c0_4, %c0_5] : memref<128x256xbf16, #tpu.memory_space<vmem>>, vector<128x256xbf16>
    %cst = arith.constant dense<0.000000e+00> : vector<16x256xf32>
    %6 = tpu.matmul %4, %5, %cst {dimension_numbers = #tpu.dot_dimension_numbers<[1], [0], [0], [1], [0, 0, 1, 1], [], []>} : vector<16x128xbf16>, vector<128x256xbf16>, vector<16x256xf32> -> vector<16x256xf32>
    %7 = arith.addf %3, %6 : vector<16x256xf32>
    %c0_6 = arith.constant 0 : index
    %c0_7 = arith.constant 0 : index
    %8 = vector.load %arg7[%c0_6, %c0_7] : memref<16x256xf32, #tpu.memory_space<vmem>>, vector<16x256xf32>
    tpu.vector_store %arg7[%c0_6, %c0_7], %7 {strides = array<i32>} : memref<16x256xf32, #tpu.memory_space<vmem>>, vector<16x256xf32>,
    %c0_i32_8 = arith.constant 0 : i32
    %9 = arith.cmpi eq, %arg2, %c0_i32_8 : i32
    %10 = arith.extui %9 : i1 to i32
    %c0_i32_9 = arith.constant 0 : i32
    %11 = arith.cmpi ne, %10, %c0_i32_9 : i32
    scf.if %11 {
      %c0_10 = arith.constant 0 : index
      %c0_11 = arith.constant 0 : index
      %12 = vector.load %arg7[%c0_10, %c0_11] : memref<16x256xf32, #tpu.memory_space<vmem>>, vector<16x256xf32>
      %c0_12 = arith.constant 0 : index
      %c0_13 = arith.constant 0 : index
      %13 = vector.load %arg5[%c0_12, %c0_13] : memref<1x256xf32, #tpu.memory_space<vmem>>, vector<1x256xf32>
      %14 = vector.broadcast %13 : vector<1x256xf32> to vector<16x256xf32>
      %15 = arith.addf %12, %14 : vector<16x256xf32>
      %16 = vector.extract_strided_slice %15 {offsets = [0, 0], sizes = [16, 128], strides = [1, 1]} : vector<16x256xf32> to vector<16x128xf32>
      %17 = vector.extract_strided_slice %15 {offsets = [0, 128], sizes = [16, 128], strides = [1, 1]} : vector<16x256xf32> to vector<16x128xf32>
      %cst_14 = arith.constant 5.000000e-01 : f32
      %18 = vector.broadcast %cst_14 : f32 to vector<16x128xf32>
      %19 = arith.mulf %18, %17 : vector<16x128xf32>
      %cst_15 = arith.constant 4.471500e-02 : f32
      %20 = vector.broadcast %cst_15 : f32 to vector<16x128xf32>
      %21 = arith.mulf %20, %17 : vector<16x128xf32>
      %22 = arith.mulf %21, %17 : vector<16x128xf32>
      %23 = arith.mulf %22, %17 : vector<16x128xf32>
      %24 = arith.addf %17, %23 : vector<16x128xf32>
      %cst_16 = arith.constant 0.797884583 : f32
      %25 = vector.broadcast %cst_16 : f32 to vector<16x128xf32>
      %26 = arith.mulf %25, %24 : vector<16x128xf32>
      %27 = math.tanh %26 : vector<16x128xf32>
      %cst_17 = arith.constant 1.000000e+00 : f32
      %28 = vector.broadcast %cst_17 : f32 to vector<16x128xf32>
      %29 = arith.addf %28, %27 : vector<16x128xf32>
      %30 = arith.mulf %19, %29 : vector<16x128xf32>
      %31 = arith.mulf %16, %30 : vector<16x128xf32>
      %c0_18 = arith.constant 0 : index
      %c0_19 = arith.constant 0 : index
      %32 = vector.load %arg6[%c0_18, %c0_19] : memref<16x128xf32, #tpu.memory_space<vmem>>, vector<16x128xf32>
      tpu.vector_store %arg6[%c0_18, %c0_19], %31 {strides = array<i32>} : memref<16x128xf32, #tpu.memory_space<vmem>>, vector<16x128xf32>,
    } else {
    }
    return
  }
  func.func @transform_0(%arg0: i32, %arg1: i32, %arg2: i32) -> (i32, i32) {
    %c0_i32 = arith.constant 0 : i32
    return %arg0, %arg2 : i32, i32
  }
  func.func @transform_1(%arg0: i32, %arg1: i32, %arg2: i32) -> (i32, i32) {
    %c0_i32 = arith.constant 0 : i32
    return %arg2, %arg1 : i32, i32
  }
  func.func @transform_2(%arg0: i32, %arg1: i32, %arg2: i32) -> (i32, i32) {
    %c0_i32 = arith.constant 0 : i32
    %c0_i32_0 = arith.constant 0 : i32
    return %c0_i32, %arg1 : i32, i32
  }
  func.func @transform_3(%arg0: i32, %arg1: i32, %arg2: i32) -> (i32, i32) {
    %c0_i32 = arith.constant 0 : i32
    return %arg0, %arg1 : i32, i32
  }
}

</mosaic_0001>

<bundles_post_ra>
// kernel: tpu_custom_call.1
= control target key start
LH: loop header
LB: loop body
LE: loop exit
PB: predicated region body
PF: predicated region fallthrough
CT: control target
= control target key end

     0   :  { %8 = vsyncpa [#allocation4], 0  ;;  %s440_s0 = inlined_call_operand.hbm [shape: bf16[16,128], index: 0, kind: input, shape index: {}]   ;;  %s441_s1 = inlined_call_operand.hbm [shape: bf16[128,256], index: 1, kind: input, shape index: {}]   ;;  %s442_s2 = inlined_call_operand.vmem [shape: f32[1,256], index: 2, kind: input, shape index: {}]   ;;  %s443_s3 = inlined_call_operand.hbm [shape: f32[16,128], index: 3, kind: output, shape index: {}]  }
   0x1   :  { %9 = vsyncpa [#allocation7], 0 }
   0x2   :  { %10 = vsyncpa [#allocation5], 0  ;;  %s394_s12 = smov [#allocation3]  }
   0x3   :  { %s16_s13 = sshll.u32 %s394_s12, 4  ;;  %s17_s13 = int_to_ptr.vmem [resolvable:$true] %s16_s13 }
   0x4   :  { %s336_s14 = scalar_lea.vmem %s17_s13, 128  ;;  %p341_p1 = scmp.lt.s32.totalorder %s17_s13, %s17_s13 }
   0x5   :  { %p337_p0 = scmp.ne.s32.totalorder %s17_s13, %s336_s14  ;;  %p342_p2 = scmp.lt.s32.totalorder %s336_s14, %s336_s14 }
   0x7   :  { %p343_p3 = por %p342_p2, %p341_p1 }
   0x9   :  { %p344_p4 = pnand %p343_p3, %p337_p0 }
   0xb   :  { %347 = shalt.err (!%p344_p4)
}
   0xc   :  { %s395_s15 = smov 64   ;;  %s396_s16 = smov 4  }
   0xd   :  { %22 = dma.hbm_to_vmem [thread:$0]  %s440_s0, 128, %s17_s13, [#allocation4], %s395_s15, %s395_s15, %s396_s16  }
   0xe   :  { %s397_s19 = smov [#allocation6]  }
   0xf   :  { %s28_s20 = sshll.u32 %s397_s19, 4  ;;  %s29_s20 = int_to_ptr.vmem [resolvable:$true] %s28_s20 }
  0x10   :  { %s356_s21 = scalar_lea.vmem %s29_s20, 2048  ;;  %p361_p6 = scmp.lt.s32.totalorder %s29_s20, %s29_s20 }
  0x11   :  { %p357_p5 = scmp.ne.s32.totalorder %s29_s20, %s356_s21  ;;  %p362_p7 = scmp.lt.s32.totalorder %s356_s21, %s356_s21 }
  0x13   :  { %p363_p8 = por %p362_p7, %p361_p6 }
  0x15   :  { %p364_p9 = pnand %p363_p8, %p357_p5 }
  0x17   :  { %367 = shalt.err (!%p364_p9)
}
  0x18   :  { %s398_s22 = smov 128   ;;  %s399_s23 = smov 8  }
  0x19   :  { %34 = dma.hbm_to_vmem [thread:$0]  %s441_s1, 2048, %s29_s20, [#allocation7], %s398_s22, %s398_s22, %s399_s23  }
  0x1a   :  { %388 = dma.done.wait [#allocation4], 128  }
  0x1b   :  { %389 = vsyncadd [#allocation4], 4294967168 }
  0x1c   :  { %390 = dma.done.wait [#allocation7], 2048  }
  0x1d   :  { %391 = vsyncadd [#allocation7], 4294965248  ;;  %v400_v0 = vmov 0   ;;  %v299_v1 = vld [vmem:[#allocation6 + $0x74] ss:$8 sps:$4 sm:$0xff]   ;;  %v220_v18 = vlaneseq }
  0x1e   :  { %192 = vmatprep.mubr.bf16.mxu0 %v400_v0  ;;  %v301_v2 = vld [vmem:[#allocation6 + $0x70] ss:$8 sps:$4 sm:$0xff]   ;;  %160 = vmatprep.subr.bf16.mxu0 %v299_v1  ;;  %v302_v3 = vld [vmem:[#allocation6 + $0x64] ss:$8 sps:$4 sm:$0xff]   ;;  %v304_v4 = vld [vmem:[#allocation6 + $0x60] ss:$8 sps:$4 sm:$0xff]  }
  0x1f   :  { %161 = vmatpush1.bf16.msra.mxu0 %v301_v2  ;;  %v305_v5 = vld [vmem:[#allocation6 + $0x54] ss:$8 sps:$4 sm:$0xff]   ;;  %v307_v6 = vld [vmem:[#allocation6 + $0x50] ss:$8 sps:$4 sm:$0xff]   ;;  %v308_v7 = vld [vmem:[#allocation6 + $0x44] ss:$8 sps:$4 sm:$0xff]  }
  0x20   :  { %162 = vmatprep.subr.bf16.mxu0 %v302_v3  ;;  %v310_v8 = vld [vmem:[#allocation6 + $0x40] ss:$8 sps:$4 sm:$0xff]   ;;  %v311_v9 = vld [vmem:[#allocation6 + $0x34] ss:$8 sps:$4 sm:$0xff]   ;;  %v313_v10 = vld [vmem:[#allocation6 + $0x30] ss:$8 sps:$4 sm:$0xff]  }
  0x21   :  { %v314_v11 = vld [vmem:[#allocation6 + $0x24] ss:$8 sps:$4 sm:$0xff]   ;;  %v316_v12 = vld [vmem:[#allocation6 + $0x20] ss:$8 sps:$4 sm:$0xff]   ;;  %v317_v13 = vld [vmem:[#allocation6 + $0x14] ss:$8 sps:$4 sm:$0xff]  }
  0x22   :  { %v319_v14 = vld [vmem:[#allocation6 + $0x10] ss:$8 sps:$4 sm:$0xff]   ;;  %v320_v15 = vld [vmem:[#allocation6 + $0x4] ss:$8 sps:$4 sm:$0xff]   ;;  %v322_v16 = vld [vmem:[#allocation6] ss:$8 sps:$4 sm:$0xff]  }
  0x23   :  { %163 = vmatpush1.bf16.msra.mxu0 %v304_v4  ;;  %v323_v17 = vld [vmem:[#allocation3] sm:$0xff]   ;;  %v221_v19 = vshrl.u32 %v220_v18, 7 }
  0x24   :  { %164 = vmatprep.subr.bf16.mxu0 %v305_v5  ;;  %v218_v21 = vld [vmem:[%s442_s2] sm:$0x3]  ;;  %s401_s2 = smov [#allocation8]  }
  0x25   :  { %v226_v20 = vsub.s32 1, %v221_v19  ;;  %v222_v39 = vsub.s32 0, %v221_v19  ;;  %s261_s26 = sshll.u32 %s401_s2, 4  ;;  %s262_s26 = int_to_ptr.vmem [resolvable:$true] %s261_s26 }
  0x26   :  { %s368_s27 = scalar_lea.vmem %s262_s26, 256  ;;  %p373_p11 = scmp.lt.s32.totalorder %s262_s26, %s262_s26 }
  0x27   :  { %165 = vmatpush1.bf16.msra.mxu0 %v307_v6  ;;  %v227_v22 = vrot.slane %v218_v21, %v226_v20  ;;  %v223_v40 = vrot.slane %v218_v21, %v222_v39  ;;  %p369_p10 = scmp.ne.s32.totalorder %s262_s26, %s368_s27  ;;  %p374_p12 = scmp.lt.s32.totalorder %s368_s27, %s368_s27 }
  0x28   :  { %166 = vmatprep.subr.bf16.mxu0 %v308_v7 }
  0x29   :  { %p375_p13 = por %p374_p12, %p373_p11 }
  0x2b   :  { %167 = vmatpush1.bf16.msra.mxu0 %v310_v8  ;;  %p376_p0 = pnand %p375_p13, %p369_p10 }
  0x2c   :  { %168 = vmatprep.subr.bf16.mxu0 %v311_v9 }
  0x2f   :  { %169 = vmatpush1.bf16.msra.mxu0 %v313_v10 }
  0x30   :  { %170 = vmatprep.subr.bf16.mxu0 %v314_v11 }
  0x33   :  { %171 = vmatpush1.bf16.msra.mxu0 %v316_v12 }
  0x34   :  { %172 = vmatprep.subr.bf16.mxu0 %v317_v13 }
  0x37   :  { %173 = vmatpush1.bf16.msra.mxu0 %v319_v14 }
  0x38   :  { %174 = vmatprep.subr.bf16.mxu0 %v320_v15 }
  0x3b   :  { %175 = vmatpush1.bf16.msra.mxu0 %v322_v16 }
  0x3e   :  { %193 = vmatmul.mubr.bf16.vlgmr.msra.gmra.mxu0 %v323_v17 }
  0xfe   :  { %v194_v23 = vpop.f32.mrf.mxu0 }
  0xff   :  { %v230_v44 = vadd.f32 %v223_v40, %v194_v23 }
 0x100   :  { %v196_v24 = vpop.f32.mrf.mxu0 }
 0x101   :  { %v231_v25 = vadd.f32 %v227_v22, %v196_v24 }
 0x102   :  { %v198_v26 = vpop.f32.mrf.mxu0 }
 0x103   :  { %v236_v27 = vmul.f32 0.044715, %v231_v25  ;;  %v234_v42 = vmul.f32 0.5, %v231_v25  ;;  %v232_v50 = vadd.f32 %v223_v40, %v198_v26 }
 0x104   :  { %v200_v28 = vpop.f32.mrf.mxu0 }
 0x105   :  { %v238_v29 = vmul.f32 %v236_v27, %v231_v25  ;;  %v233_v30 = vadd.f32 %v227_v22, %v200_v28 }
 0x107   :  { %v240_v31 = vmul.f32 %v238_v29, %v231_v25  ;;  %v237_v32 = vmul.f32 0.044715, %v233_v30  ;;  %v235_v47 = vmul.f32 0.5, %v233_v30 }
 0x109   :  { %v242_v33 = vadd.f32 %v240_v31, %v231_v25  ;;  %v239_v34 = vmul.f32 %v237_v32, %v233_v30 }
 0x10b   :  { %v241_v35 = vmul.f32 %v239_v34, %v233_v30  ;;  %v244_v36 = vmul.f32 0.7978846, %v242_v33 }
 0x10d   :  { %v243_v37 = vadd.f32 %v241_v35, %v233_v30  ;;  %324 = vtanh.f32 %v244_v36 }
 0x10f   :  { %v245_v38 = vmul.f32 0.7978846, %v243_v37 }
 0x111   :  { %326 = vtanh.f32 %v245_v38 }
 0x11a   :  { %v325_v41 = vpop.eup %324 }
 0x11b   :  { %v248_v43 = vadd.f32 1.0, %v325_v41 }
 0x11d   :  { %v250_v45 = vmul.f32 %v248_v43, %v234_v42 }
 0x11e   :  { %v327_v46 = vpop.eup %326 }
 0x11f   :  { %v249_v48 = vadd.f32 1.0, %v327_v46  ;;  %v252_v49 = vmul.f32 %v250_v45, %v230_v44 }
 0x121   :  { %v251_v51 = vmul.f32 %v249_v48, %v235_v47  ;;  %254 = vst [vmem:[#allocation8] sm:$0xff] %v252_v49 }
 0x123   :  { %v253_v52 = vmul.f32 %v251_v51, %v232_v50 }
 0x125   :  { %255 = vst [vmem:[#allocation8 + $0x8] sm:$0xff] %v253_v52 }
 0x126   :  { %379 = shalt.err (!%p376_p0)
}
 0x127   :  { %267 = dma.vmem_to_hbm [thread:$0]  %s262_s26, 256, %s443_s3, [#allocation5], %s398_s22, %s398_s22, %s399_s23  }
 0x128   :  { %392 = dma.done.wait [#allocation5], 256  }
 0x129   :  { %393 = vsyncadd [#allocation5], 4294967040 }
 0x12a   :  { %271 = vsyncpa [#allocation4], 1 }
 0x12b   :  { %272 = vsyncpa [#allocation7], 1 }
 0x12c   :  { %273 = vsyncpa [#allocation5], 1 }

</bundles_post_ra>
